<compile_context>
chip_gen: v7x
topology: tpu7x:2x2x1
jax: 0.10.0
libtpu: 0.0.40
codegen_flags: <defaults>
</compile_context>

<pallas_src>
import functools
import math

import jax
import jax.numpy as jnp
from jax.experimental import pallas as pl
from jax.experimental.pallas import tpu as pltpu

_LANE = 128
_VMEM_LIMIT_BYTES = 32 * 1024 * 1024
_TILE_TARGET_BYTES = 2 * 1024 * 1024

# Cody-Waite split of pi/2 (2x the classic Cephes pi/4 split) and minimax
# polynomial coefficients valid for |r| <= pi/4 (Cephes sinf / cosf).
_TWO_OVER_PI = 0.6366197723675814
_PIO2_1 = 1.5703125
_PIO2_2 = 4.837512969970703125e-4
_PIO2_3 = 7.54978995489188216e-8
_SIN_C1, _SIN_C2, _SIN_C3 = -1.6666654611e-1, 8.3321608736e-3, -1.9515295891e-4
_COS_C1, _COS_C2, _COS_C3 = (4.166664568298827e-2, -1.388731625493765e-3,
                             2.443315711809948e-5)


def _sincos(p):
    """Return (sin(p), cos(p)) in f32 with a single shared range reduction."""
    p = p.astype(jnp.float32)
    kf = jnp.floor(p * _TWO_OVER_PI + 0.5)          # nearest multiple of pi/2
    k = kf.astype(jnp.int32)
    r = ((p - kf * _PIO2_1) - kf * _PIO2_2) - kf * _PIO2_3
    r2 = r * r
    sin_r = r + r * r2 * (_SIN_C1 + r2 * (_SIN_C2 + r2 * _SIN_C3))
    cos_r = 1.0 - 0.5 * r2 + r2 * r2 * (_COS_C1 + r2 * (_COS_C2 + r2 * _COS_C3))
    q = k & 3
    swap = (q & 1) == 1                             # odd quadrant: magnitudes swap
    sin_m = jnp.where(swap, cos_r, sin_r)
    cos_m = jnp.where(swap, sin_r, cos_r)
    s = jnp.where((q == 2) | (q == 3), -sin_m, sin_m)
    c = jnp.where((q == 1) | (q == 2), -cos_m, cos_m)
    return s, c


def _eq_kernel(phase_ref, amp_ref, real_ref, imag_ref):
    # All refs are (tm, L); pure elementwise streaming op.
    s, c = _sincos(phase_ref[...])
    a = amp_ref[...].astype(jnp.float32)
    real_ref[...] = (c * a).astype(real_ref.dtype)
    imag_ref[...] = (s * a).astype(imag_ref.dtype)


def _bcast_kernel(phase_ref, amp_ref, real_ref, imag_ref, *, d):
    # phase_ref: (tm, g); amp/real/imag refs: (tm, g*d).
    # sincos is evaluated on the compact (tm, g) tile (numel(phase) transcendentals),
    # then broadcast across the trailing d lanes before a lane-dense store.
    s, c = _sincos(phase_ref[...])
    tm, g = phase_ref.shape
    a = amp_ref[...].astype(jnp.float32).reshape(tm, g, d)
    real_ref[...] = (c[:, :, None] * a).reshape(tm, g * d).astype(real_ref.dtype)
    imag_ref[...] = (s[:, :, None] * a).reshape(tm, g * d).astype(imag_ref.dtype)


def _pick_rows(n_rows, row_bytes, target_bytes=_TILE_TARGET_BYTES):
    """Rows per block: ~target_bytes per output tile, multiple of 8, and at
    least 2 grid programs whenever there is more than one 8-row chunk of work
    (so v7x's two TensorCores both get blocks)."""
    rows = max(1, target_bytes // max(1, row_bytes))
    rows = max(8, (rows // 8) * 8)
    if rows >= n_rows:
        if n_rows > 8:
            rows = max(8, (((n_rows + 1) // 2 + 7) // 8) * 8)
        else:
            rows = n_rows
    return int(rows)


def _run_2d(kernel, phase2d, amp2d, out_dtype):
    m, lp = phase2d.shape
    _, l = amp2d.shape
    tm = _pick_rows(m, l * jnp.dtype(out_dtype).itemsize)
    grid = (pl.cdiv(m, tm),)
    real, imag = pl.pallas_call(
        kernel,
        out_shape=(
            jax.ShapeDtypeStruct((m, l), out_dtype),
            jax.ShapeDtypeStruct((m, l), out_dtype),
        ),
        grid_spec=pltpu.PrefetchScalarGridSpec(
            num_scalar_prefetch=0,
            grid=grid,
            in_specs=[
                pl.BlockSpec((tm, lp), lambda i: (i, 0)),
                pl.BlockSpec((tm, l), lambda i: (i, 0)),
            ],
            out_specs=[
                pl.BlockSpec((tm, l), lambda i: (i, 0)),
                pl.BlockSpec((tm, l), lambda i: (i, 0)),
            ]),
        compiler_params=pltpu.CompilerParams(
            dimension_semantics=("parallel",),
            vmem_limit_bytes=_VMEM_LIMIT_BYTES),
    )(phase2d, amp2d)
    return real, imag


def complex_multiply(inputs):
    """Pallas implementation of ComplexMultiply.forward.

    inputs: [phase, amplitude]; returns [real_part, imag_part].
    """
    if not isinstance(inputs, (list, tuple)):
        raise ValueError('This layer should be called on a list of 2 inputs.')
    if len(inputs) != 2:
        raise ValueError('This layer should be called on a list of 2 inputs.'
                         'Got ' + str(len(inputs)) + ' inputs.')
    phase, amplitude = inputs
    out_dtype = jnp.result_type(phase.dtype, amplitude.dtype)
    # TODO(synk): in-kernel compute path is f32; f64 inputs (x64 mode) would
    # lose precision relative to the torch reference.

    if amplitude.ndim == phase.ndim + 1:
        d = int(amplitude.shape[-1])
        bshape = tuple(jnp.broadcast_shapes(phase.shape, amplitude.shape[:-1]))
        out_shape = bshape + (d,)
        if tuple(phase.shape) != bshape:
            phase = jnp.broadcast_to(phase, bshape)
        if tuple(amplitude.shape) != out_shape:
            amplitude = jnp.broadcast_to(amplitude, out_shape)
        m = math.prod(bshape) if bshape else 1
        g = _LANE // math.gcd(d, _LANE)          # fold g phase rows into lanes
        m_pad = -(-m // g) * g
        phase_flat = phase.reshape(m)
        amp_flat = amplitude.reshape(m, d)
        if m_pad != m:
            phase_flat = jnp.pad(phase_flat, (0, m_pad - m))
            amp_flat = jnp.pad(amp_flat, ((0, m_pad - m), (0, 0)))
        phase2d = phase_flat.reshape(m_pad // g, g)
        amp2d = amp_flat.reshape(m_pad // g, g * d)
        kernel = functools.partial(_bcast_kernel, d=d)
        real2d, imag2d = _run_2d(kernel, phase2d, amp2d, out_dtype)
        real = real2d.reshape(m_pad, d)[:m].reshape(out_shape)
        imag = imag2d.reshape(m_pad, d)[:m].reshape(out_shape)
    elif amplitude.ndim == phase.ndim:
        out_shape = tuple(jnp.broadcast_shapes(phase.shape, amplitude.shape))
        if tuple(phase.shape) != out_shape:
            phase = jnp.broadcast_to(phase, out_shape)
        if tuple(amplitude.shape) != out_shape:
            amplitude = jnp.broadcast_to(amplitude, out_shape)
        n = math.prod(out_shape) if out_shape else 1
        lanes = None
        for cand in (4096, 2048, 1024, 512, 256, 128):
            if n % cand == 0:
                lanes = cand
                break
        phase_flat = phase.reshape(n)
        amp_flat = amplitude.reshape(n)
        if lanes is None:
            # Awkward length: pad to a multiple of 1024 (8x128) so every store
            # is an unmasked full-lane vst; slice the pad off afterwards.
            n_pad = -(-n // 1024) * 1024
            lanes = 4096 if n_pad % 4096 == 0 else (2048 if n_pad % 2048 == 0 else 1024)
            phase_flat = jnp.pad(phase_flat, (0, n_pad - n))
            amp_flat = jnp.pad(amp_flat, (0, n_pad - n))
        else:
            n_pad = n
        m = n_pad // lanes
        real2d, imag2d = _run_2d(_eq_kernel,
                                 phase_flat.reshape(m, lanes),
                                 amp_flat.reshape(m, lanes), out_dtype)
        real = real2d.reshape(n_pad)[:n].reshape(out_shape)
        imag = imag2d.reshape(n_pad)[:n].reshape(out_shape)
    else:
        raise ValueError('input dimensions of phase and amplitude do not '
                         'agree to each other.')
    return [real, imag]


def _reference(phase, amplitude):
    if amplitude.ndim == phase.ndim + 1:
        c = jnp.cos(phase)[..., None]
        s = jnp.sin(phase)[..., None]
    else:
        c = jnp.cos(phase)
        s = jnp.sin(phase)
    return c * amplitude, s * amplitude


if __name__ == "__main__":
    key = jax.random.PRNGKey(0)
    k1, k2, k3, k4, k5 = jax.random.split(key, 5)
    B, T, D = 2, 8, 32

    # Case 1: equal ranks — phase and amplitude both (B, T, D).
    phase_eq = jax.random.normal(k1, (B, T, D), dtype=jnp.float32)
    amp = jax.random.normal(k2, (B, T, D), dtype=jnp.float32)
    out_eq = complex_multiply([phase_eq, amp])
    jax.block_until_ready(out_eq)
    ref_r, ref_i = _reference(phase_eq, amp)
    assert jnp.allclose(out_eq[0], ref_r, atol=1e-5, rtol=1e-5)
    assert jnp.allclose(out_eq[1], ref_i, atol=1e-5, rtol=1e-5)

    # Case 2: amplitude has one more dim than phase — phase (B, T), amp (B, T, D).
    phase_b = jax.random.normal(k3, (B, T), dtype=jnp.float32)
    out_b = complex_multiply([phase_b, amp])
    jax.block_until_ready(out_b)
    ref_r2, ref_i2 = _reference(phase_b, amp)
    assert jnp.allclose(out_b[0], ref_r2, atol=1e-5, rtol=1e-5)
    assert jnp.allclose(out_b[1], ref_i2, atol=1e-5, rtol=1e-5)

    # Case 3: awkward equal-rank shape (exercises pad-to-1024 path) with a
    # wider phase range to validate the fused sincos range reduction.
    phase_o = 4.0 * jax.random.normal(k4, (3, 5, 7), dtype=jnp.float32)
    amp_o = jax.random.normal(k5, (3, 5, 7), dtype=jnp.float32)
    out_o = complex_multiply([phase_o, amp_o])
    jax.block_until_ready(out_o)
    ref_r3, ref_i3 = _reference(phase_o, amp_o)
    assert jnp.allclose(out_o[0], ref_r3, atol=1e-5, rtol=1e-5)
    assert jnp.allclose(out_o[1], ref_i3, atol=1e-5, rtol=1e-5)

    print("KERNEL_OK")
</pallas_src>

<mosaic_0001>
module attributes {stable_mosaic.version = 11 : i64} {
  func.func @_eq_kernel(%arg0: i32, %arg1: memref<1x512xf32, #tpu.memory_space<vmem>>, %arg2: memref<1x512xf32, #tpu.memory_space<vmem>>, %arg3: memref<1x512xf32, #tpu.memory_space<vmem>>, %arg4: memref<1x512xf32, #tpu.memory_space<vmem>>) attributes {dimension_semantics = [#tpu.dimension_semantics<parallel>], iteration_bounds = array<i64: 1>, scalar_prefetch = 0 : i64, scratch_operands = 0 : i64, tpu.core_type = #tpu.core_type<tc>, window_params = [{transform_indices = @transform_0, window_bounds = array<i64: 1, 512>}, {transform_indices = @transform_1, window_bounds = array<i64: 1, 512>}, {transform_indices = @transform_2, window_bounds = array<i64: 1, 512>}, {transform_indices = @transform_3, window_bounds = array<i64: 1, 512>}]} {
    %c0 = arith.constant 0 : index
    %c0_0 = arith.constant 0 : index
    %0 = vector.load %arg1[%c0, %c0_0] : memref<1x512xf32, #tpu.memory_space<vmem>>, vector<1x512xf32>
    %cst = arith.constant 0.636619746 : f32
    %1 = vector.broadcast %cst : f32 to vector<1x512xf32>
    %2 = arith.mulf %0, %1 : vector<1x512xf32>
    %cst_1 = arith.constant 5.000000e-01 : f32
    %3 = vector.broadcast %cst_1 : f32 to vector<1x512xf32>
    %4 = arith.addf %2, %3 : vector<1x512xf32>
    %5 = math.floor %4 : vector<1x512xf32>
    %6 = arith.fptosi %5 : vector<1x512xf32> to vector<1x512xi32>
    %cst_2 = arith.constant 1.5703125 : f32
    %7 = vector.broadcast %cst_2 : f32 to vector<1x512xf32>
    %8 = arith.mulf %5, %7 : vector<1x512xf32>
    %9 = arith.subf %0, %8 : vector<1x512xf32>
    %cst_3 = arith.constant 4.83751297E-4 : f32
    %10 = vector.broadcast %cst_3 : f32 to vector<1x512xf32>
    %11 = arith.mulf %5, %10 : vector<1x512xf32>
    %12 = arith.subf %9, %11 : vector<1x512xf32>
    %cst_4 = arith.constant 7.549790e-08 : f32
    %13 = vector.broadcast %cst_4 : f32 to vector<1x512xf32>
    %14 = arith.mulf %5, %13 : vector<1x512xf32>
    %15 = arith.subf %12, %14 : vector<1x512xf32>
    %16 = arith.mulf %15, %15 : vector<1x512xf32>
    %17 = arith.mulf %15, %16 : vector<1x512xf32>
    %cst_5 = arith.constant -1.95152956E-4 : f32
    %18 = vector.broadcast %cst_5 : f32 to vector<1x512xf32>
    %19 = arith.mulf %16, %18 : vector<1x512xf32>
    %cst_6 = arith.constant 0.00833216123 : f32
    %20 = vector.broadcast %cst_6 : f32 to vector<1x512xf32>
    %21 = arith.addf %20, %19 : vector<1x512xf32>
    %22 = arith.mulf %16, %21 : vector<1x512xf32>
    %cst_7 = arith.constant -0.166666552 : f32
    %23 = vector.broadcast %cst_7 : f32 to vector<1x512xf32>
    %24 = arith.addf %23, %22 : vector<1x512xf32>
    %25 = arith.mulf %17, %24 : vector<1x512xf32>
    %26 = arith.addf %15, %25 : vector<1x512xf32>
    %cst_8 = arith.constant 5.000000e-01 : f32
    %27 = vector.broadcast %cst_8 : f32 to vector<1x512xf32>
    %28 = arith.mulf %27, %16 : vector<1x512xf32>
    %cst_9 = arith.constant 1.000000e+00 : f32
    %29 = vector.broadcast %cst_9 : f32 to vector<1x512xf32>
    %30 = arith.subf %29, %28 : vector<1x512xf32>
    %31 = arith.mulf %16, %16 : vector<1x512xf32>
    %cst_10 = arith.constant 2.44331568E-5 : f32
    %32 = vector.broadcast %cst_10 : f32 to vector<1x512xf32>
    %33 = arith.mulf %16, %32 : vector<1x512xf32>
    %cst_11 = arith.constant -0.00138873165 : f32
    %34 = vector.broadcast %cst_11 : f32 to vector<1x512xf32>
    %35 = arith.addf %34, %33 : vector<1x512xf32>
    %36 = arith.mulf %16, %35 : vector<1x512xf32>
    %cst_12 = arith.constant 0.0416666456 : f32
    %37 = vector.broadcast %cst_12 : f32 to vector<1x512xf32>
    %38 = arith.addf %37, %36 : vector<1x512xf32>
    %39 = arith.mulf %31, %38 : vector<1x512xf32>
    %40 = arith.addf %30, %39 : vector<1x512xf32>
    %c3_i32 = arith.constant 3 : i32
    %41 = vector.broadcast %c3_i32 : i32 to vector<1x512xi32>
    %42 = arith.andi %6, %41 : vector<1x512xi32>
    %c1_i32 = arith.constant 1 : i32
    %43 = vector.broadcast %c1_i32 : i32 to vector<1x512xi32>
    %44 = arith.andi %42, %43 : vector<1x512xi32>
    %c1_i32_13 = arith.constant 1 : i32
    %45 = vector.broadcast %c1_i32_13 : i32 to vector<1x512xi32>
    %46 = arith.cmpi eq, %44, %45 : vector<1x512xi32>
    %47 = arith.select %46, %40, %26 : vector<1x512xi1>, vector<1x512xf32>
    %48 = arith.select %46, %26, %40 : vector<1x512xi1>, vector<1x512xf32>
    %c2_i32 = arith.constant 2 : i32
    %49 = vector.broadcast %c2_i32 : i32 to vector<1x512xi32>
    %50 = arith.cmpi eq, %42, %49 : vector<1x512xi32>
    %c3_i32_14 = arith.constant 3 : i32
    %51 = vector.broadcast %c3_i32_14 : i32 to vector<1x512xi32>
    %52 = arith.cmpi eq, %42, %51 : vector<1x512xi32>
    %53 = arith.ori %50, %52 : vector<1x512xi1>
    %cst_15 = arith.constant 0.000000e+00 : f32
    %54 = vector.broadcast %cst_15 : f32 to vector<1x512xf32>
    %55 = arith.subf %54, %47 : vector<1x512xf32>
    %56 = arith.select %53, %55, %47 : vector<1x512xi1>, vector<1x512xf32>
    %c1_i32_16 = arith.constant 1 : i32
    %57 = vector.broadcast %c1_i32_16 : i32 to vector<1x512xi32>
    %58 = arith.cmpi eq, %42, %57 : vector<1x512xi32>
    %c2_i32_17 = arith.constant 2 : i32
    %59 = vector.broadcast %c2_i32_17 : i32 to vector<1x512xi32>
    %60 = arith.cmpi eq, %42, %59 : vector<1x512xi32>
    %61 = arith.ori %58, %60 : vector<1x512xi1>
    %cst_18 = arith.constant 0.000000e+00 : f32
    %62 = vector.broadcast %cst_18 : f32 to vector<1x512xf32>
    %63 = arith.subf %62, %48 : vector<1x512xf32>
    %64 = arith.select %61, %63, %48 : vector<1x512xi1>, vector<1x512xf32>
    %c0_19 = arith.constant 0 : index
    %c0_20 = arith.constant 0 : index
    %65 = vector.load %arg2[%c0_19, %c0_20] : memref<1x512xf32, #tpu.memory_space<vmem>>, vector<1x512xf32>
    %66 = arith.mulf %64, %65 : vector<1x512xf32>
    %c0_21 = arith.constant 0 : index
    %c0_22 = arith.constant 0 : index
    %67 = vector.load %arg3[%c0_21, %c0_22] : memref<1x512xf32, #tpu.memory_space<vmem>>, vector<1x512xf32>
    tpu.vector_store %arg3[%c0_21, %c0_22], %66 {strides = array<i32>} : memref<1x512xf32, #tpu.memory_space<vmem>>, vector<1x512xf32>,
    %68 = arith.mulf %56, %65 : vector<1x512xf32>
    %c0_23 = arith.constant 0 : index
    %c0_24 = arith.constant 0 : index
    %69 = vector.load %arg4[%c0_23, %c0_24] : memref<1x512xf32, #tpu.memory_space<vmem>>, vector<1x512xf32>
    tpu.vector_store %arg4[%c0_23, %c0_24], %68 {strides = array<i32>} : memref<1x512xf32, #tpu.memory_space<vmem>>, vector<1x512xf32>,
    return
  }
  func.func @transform_0(%arg0: i32) -> (i32, i32) {
    %c0_i32 = arith.constant 0 : i32
    %c0_i32_0 = arith.constant 0 : i32
    return %arg0, %c0_i32 : i32, i32
  }
  func.func @transform_1(%arg0: i32) -> (i32, i32) {
    %c0_i32 = arith.constant 0 : i32
    %c0_i32_0 = arith.constant 0 : i32
    return %arg0, %c0_i32 : i32, i32
  }
  func.func @transform_2(%arg0: i32) -> (i32, i32) {
    %c0_i32 = arith.constant 0 : i32
    %c0_i32_0 = arith.constant 0 : i32
    return %arg0, %c0_i32 : i32, i32
  }
  func.func @transform_3(%arg0: i32) -> (i32, i32) {
    %c0_i32 = arith.constant 0 : i32
    %c0_i32_0 = arith.constant 0 : i32
    return %arg0, %c0_i32 : i32, i32
  }
}

</mosaic_0001>

<bundles_post_ra>
// kernel: tpu_custom_call.1
= control target key start
LH: loop header
LB: loop body
LE: loop exit
PB: predicated region body
PF: predicated region fallthrough
CT: control target
= control target key end

     0   :  { %9 = vsyncpa [#allocation3], 0  ;;  %s294_s0 = inlined_call_operand.hbm [shape: f32[1,512], index: 0, kind: input, shape index: {}]   ;;  %s295_s1 = inlined_call_operand.hbm [shape: f32[1,512], index: 1, kind: input, shape index: {}]   ;;  %s296_s2 = inlined_call_operand.hbm [shape: f32[1,512], index: 2, kind: output, shape index: {0}]   ;;  %s297_s3 = inlined_call_operand.hbm [shape: f32[1,512], index: 3, kind: output, shape index: {1}]  }
   0x1   :  { %10 = vsyncpa [#allocation6], 0 }
   0x2   :  { %11 = vsyncpa [#allocation4], 0 }
   0x3   :  { %12 = vsyncpa [#allocation9], 0  ;;  %s222_s12 = smov [#allocation2]   ;;  %s223_s14 = smov [#allocation5]  }
   0x4   :  { %s19_s13 = sshll.u32 %s222_s12, 4  ;;  %s29_s15 = sshll.u32 %s223_s14, 4  ;;  %s20_s13 = int_to_ptr.vmem [resolvable:$true] %s19_s13  ;;  %s30_s15 = int_to_ptr.vmem [resolvable:$true] %s29_s15 }
   0x5   :  { %s126_s18 = scalar_lea.hbm %s294_s0, 64 }
   0x6   :  { %p127_p0 = scmp.ne.s32.totalorder %s294_s0, %s126_s18  ;;  %p130_p1 = scmp.lt.u32.totalorder %s126_s18, %s294_s0 }
   0x8   :  { %p132_p2 = pnand %p130_p1, %p127_p0 }
   0xa   :  { %135 = shalt.err (!%p132_p2)
}
   0xb   :  { %s136_s23 = scalar_lea.vmem %s20_s13, 64  ;;  %p141_p4 = scmp.lt.s32.totalorder %s20_s13, %s20_s13 }
   0xc   :  { %p137_p3 = scmp.ne.s32.totalorder %s20_s13, %s136_s23  ;;  %p142_p5 = scmp.lt.s32.totalorder %s136_s23, %s136_s23 }
   0xe   :  { %p143_p6 = por %p142_p5, %p141_p4 }
  0x10   :  { %p144_p7 = pnand %p143_p6, %p137_p3 }
  0x12   :  { %147 = shalt.err (!%p144_p7)
}
  0x13   :  { %22 = dma.hbm_to_vmem [thread:$0]  %s294_s0, 64, %s20_s13, [#allocation3]  }
  0x14   :  { %s148_s28 = scalar_lea.hbm %s295_s1, 64 }
  0x15   :  { %p149_p8 = scmp.ne.s32.totalorder %s295_s1, %s148_s28  ;;  %p152_p9 = scmp.lt.u32.totalorder %s148_s28, %s295_s1 }
  0x17   :  { %p154_p10 = pnand %p152_p9, %p149_p8 }
  0x19   :  { %157 = shalt.err (!%p154_p10)
}
  0x1a   :  { %s158_s6 = scalar_lea.vmem %s30_s15, 64  ;;  %p163_p12 = scmp.lt.s32.totalorder %s30_s15, %s30_s15 }
  0x1b   :  { %p159_p11 = scmp.ne.s32.totalorder %s30_s15, %s158_s6  ;;  %p164_p13 = scmp.lt.s32.totalorder %s158_s6, %s158_s6 }
  0x1d   :  { %p165_p0 = por %p164_p13, %p163_p12 }
  0x1f   :  { %p166_p1 = pnand %p165_p0, %p159_p11 }
  0x21   :  { %169 = shalt.err (!%p166_p1)
}
  0x22   :  { %32 = dma.hbm_to_vmem [thread:$0]  %s295_s1, 64, %s30_s15, [#allocation6]  }
  0x23   :  { %214 = dma.done.wait [#allocation3], 64  }
  0x24   :  { %215 = vsyncadd [#allocation3], 4294967232 }
  0x25   :  { %216 = dma.done.wait [#allocation6], 64  }
  0x26   :  { %217 = vsyncadd [#allocation6], 4294967232  ;;  %v39_v0 = vld [vmem:[#allocation2] sm:$0xf]  ;;  %v83_v31 = vlaneseq  ;;  %v81_v35 = vld [vmem:[#allocation5] sm:$0xf] }
  0x27   :  { %v40_v1 = vmul.f32 0.63661975, %v39_v0  ;;  %s224_s1 = smov [#allocation7]   ;;  %s225_s9 = smov [#allocation8]  }
  0x28   :  { %s96_s8 = sshll.u32 %s224_s1, 4  ;;  %s106_s10 = sshll.u32 %s225_s9, 4  ;;  %vm85_vm6 = vcmp.lt.s32.totalorder %v83_v31, 512  ;;  %s97_s8 = int_to_ptr.vmem [resolvable:$true] %s96_s8  ;;  %s107_s10 = int_to_ptr.vmem [resolvable:$true] %s106_s10 }
  0x29   :  { %v41_v2 = vadd.f32 0.5, %v40_v1  ;;  %s170_s11 = scalar_lea.vmem %s97_s8, 64  ;;  %p175_p3 = scmp.lt.s32.totalorder %s97_s8, %s97_s8 }
  0x2a   :  { %p171_p2 = scmp.ne.s32.totalorder %s97_s8, %s170_s11  ;;  %p176_p4 = scmp.lt.s32.totalorder %s170_s11, %s170_s11 }
  0x2b   :  { %v42_v3 = vfloor.f32 %v41_v2 }
  0x2c   :  { %p177_p5 = por %p176_p4, %p175_p3 }
  0x2d   :  { %v44_v4 = vmul.f32 1.5703125, %v42_v3  ;;  %v46_v5 = vmul.f32 0.0004837513, %v42_v3  ;;  %v48_v7 = vmul.f32 7.54979e-08, %v42_v3  ;;  %v120_v8 = vtrunc.f32 %v42_v3 }
  0x2e   :  { %p178_p6 = pnand %p177_p5, %p171_p2 }
  0x2f   :  { %v45_v6 = vsub.f32 %v39_v0, %v44_v4  ;;  %v121_v11 = vcvt.f32.s32 %v120_v8 }
  0x31   :  { %v47_v9 = vsub.f32 %v45_v6, %v46_v5  ;;  %v67_v16 = vand.u32 3, %v121_v11 }
  0x33   :  { %v49_v10 = vsub.f32 %v47_v9, %v48_v7  ;;  %v68_v24 = vand.u32 1, %v67_v16  ;;  %vm72_vm0 = vcmp.eq.s32.totalorder %v67_v16, 2  ;;  %vm77_vm1 = vcmp.eq.s32.totalorder %v67_v16, 1 }
  0x34   :  { %vm73_vm3 = vcmp.eq.s32.totalorder %v67_v16, 3  ;;  %vm78_vm4 = vmor %vm77_vm1, %vm72_vm0 }
  0x35   :  { %v50_v12 = vmul.f32 %v49_v10, %v49_v10  ;;  %vm69_vm2 = vcmp.eq.s32.totalorder %v68_v24, 1  ;;  %vm74_vm5 = vmor %vm72_vm0, %vm73_vm3 }
  0x37   :  { %v52_v13 = vmul.f32 -0.00019515296, %v50_v12  ;;  %v61_v14 = vmul.f32 2.4433157e-05, %v50_v12  ;;  %v58_v17 = vmul.f32 0.5, %v50_v12  ;;  %v51_v19 = vmul.f32 %v50_v12, %v49_v10 }
  0x38   :  { %v60_v21 = vmul.f32 %v50_v12, %v50_v12 }
  0x39   :  { %v53_v15 = vadd.f32 0.008332161, %v52_v13  ;;  %v62_v18 = vadd.f32 -0.0013887316, %v61_v14  ;;  %v59_v25 = vsub.f32 1.0, %v58_v17 }
  0x3b   :  { %v54_v20 = vmul.f32 %v53_v15, %v50_v12  ;;  %v63_v22 = vmul.f32 %v62_v18, %v50_v12 }
  0x3d   :  { %v55_v23 = vadd.f32 -0.16666655, %v54_v20  ;;  %v64_v26 = vadd.f32 0.041666646, %v63_v22 }
  0x3f   :  { %v56_v27 = vmul.f32 %v55_v23, %v51_v19  ;;  %v65_v28 = vmul.f32 %v64_v26, %v60_v21 }
  0x41   :  { %v57_v29 = vadd.f32 %v56_v27, %v49_v10  ;;  %v66_v30 = vadd.f32 %v65_v28, %v59_v25 }
  0x43   :  { %v71_v32 = vsel %vm69_vm2, %v57_v29, %v66_v30  ;;  %v70_v33 = vsel %vm69_vm2, %v66_v30, %v57_v29 }
  0x44   :  { %v79_v34 = vsub.f32 0.0, %v71_v32  ;;  %v75_v36 = vsub.f32 0.0, %v70_v33 }
  0x46   :  { %v80_v37 = vsel %vm78_vm4, %v79_v34, %v71_v32  ;;  %v76_v38 = vsel %vm74_vm5, %v75_v36, %v70_v33 }
  0x47   :  { %v82_v39 = vmul.f32 %v81_v35, %v80_v37  ;;  %v88_v40 = vmul.f32 %v81_v35, %v76_v38 }
  0x49   :  { %87 = vst.msk [vmem:[#allocation7] sm:$0xf] %vm85_vm6, %v82_v39  ;;  %89 = vst.msk [vmem:[#allocation8] sm:$0xf] %vm85_vm6, %v88_v40 }
  0x4a   :  { %181 = shalt.err (!%p178_p6)
}
  0x4b   :  { %s182_s14 = scalar_lea.hbm %s296_s2, 64 }
  0x4c   :  { %p183_p7 = scmp.ne.s32.totalorder %s296_s2, %s182_s14  ;;  %p186_p8 = scmp.lt.u32.totalorder %s182_s14, %s296_s2 }
  0x4e   :  { %p188_p9 = pnand %p186_p8, %p183_p7 }
  0x50   :  { %191 = shalt.err (!%p188_p9)
}
  0x51   :  { %99 = dma.vmem_to_hbm [thread:$0]  %s97_s8, 64, %s296_s2, [#allocation4]  }
  0x52   :  { %s192_s21 = scalar_lea.vmem %s107_s10, 64  ;;  %p197_p11 = scmp.lt.s32.totalorder %s107_s10, %s107_s10 }
  0x53   :  { %p193_p10 = scmp.ne.s32.totalorder %s107_s10, %s192_s21  ;;  %p198_p12 = scmp.lt.s32.totalorder %s192_s21, %s192_s21 }
  0x55   :  { %p199_p13 = por %p198_p12, %p197_p11 }
  0x57   :  { %p200_p0 = pnand %p199_p13, %p193_p10 }
  0x59   :  { %203 = shalt.err (!%p200_p0)
}
  0x5a   :  { %s204_s24 = scalar_lea.hbm %s297_s3, 64 }
  0x5b   :  { %p205_p1 = scmp.ne.s32.totalorder %s297_s3, %s204_s24  ;;  %p208_p2 = scmp.lt.u32.totalorder %s204_s24, %s297_s3 }
  0x5d   :  { %p210_p3 = pnand %p208_p2, %p205_p1 }
  0x5f   :  { %213 = shalt.err (!%p210_p3)
}
  0x60   :  { %109 = dma.vmem_to_hbm [thread:$0]  %s107_s10, 64, %s297_s3, [#allocation9]  }
  0x61   :  { %218 = dma.done.wait [#allocation4], 64  }
  0x62   :  { %219 = vsyncadd [#allocation4], 4294967232 }
  0x63   :  { %220 = dma.done.wait [#allocation9], 64  }
  0x64   :  { %221 = vsyncadd [#allocation9], 4294967232 }
  0x65   :  { %116 = vsyncpa [#allocation3], 1 }
  0x66   :  { %117 = vsyncpa [#allocation6], 1 }
  0x67   :  { %118 = vsyncpa [#allocation4], 1 }
  0x68   :  { %119 = vsyncpa [#allocation9], 1 }

</bundles_post_ra>
